<compile_context>
chip_gen: v7x
topology: tpu7x:2x2x1
jax: 0.10.0
libtpu: 0.0.40
codegen_flags: <defaults>
</compile_context>

<pallas_src>
import jax
import jax.numpy as jnp
from jax.experimental import pallas as pl
from jax.experimental.pallas import tpu as pltpu


def _round_up(x, m):
    return (x + m - 1) // m * m


def _mlp_kernel_simple(x_ref, w1_ref, b1_ref, w2_ref, b2_ref, w3_ref, b3_ref,
                       w4_ref, b4_ref, o_ref):
    """Unpacked fallback (used when the batch tile is too small to chunk)."""
    x = x_ref[...]                                                     # (1, Bt)
    h = jnp.maximum(w1_ref[...] * x + b1_ref[...], 0.0)               # (64, Bt)
    w2 = w2_ref[...]
    h = jnp.dot(w2, h.astype(w2.dtype), preferred_element_type=jnp.float32)
    h = jnp.maximum(h + b2_ref[...], 0.0)
    w3 = w3_ref[...]
    h = jnp.dot(w3, h.astype(w3.dtype), preferred_element_type=jnp.float32)
    h = jnp.maximum(h + b3_ref[...], 0.0)
    o_ref[...] = jnp.sum(h * w4_ref[...], axis=0, keepdims=True) + b4_ref[...]


def _make_packed_kernel(n_chunks, chunk):
    """Kernel with W2/W3 packed block-diagonally into a 128x128 stationary
    weight and a one-chunk software pipeline over batch sub-chunks."""

    def kernel(x_ref, w1_ref, b1_ref, wp_ref, b2_ref, b3_ref, w4_ref, b4_ref,
               o_ref):
        w1 = w1_ref[...]            # (64, 1)  f32
        b1 = b1_ref[...]            # (64, 1)  f32
        wp = wp_ref[...]            # (128, 128) stationary, bf16 or f32
        b2 = b2_ref[...]            # (64, 1)  f32
        b3 = b3_ref[...]            # (64, 1)  f32
        w4 = w4_ref[...]            # (64, 1)  f32
        b4 = b4_ref[...]            # (1, 1)   f32
        mxu_dtype = wp.dtype
        zeros_half = jnp.zeros((64, chunk), mxu_dtype)

        # Iteration j stacks [h1(chunk j) ; h2(chunk j-1)] and a single
        # 128x128 matmul produces layer-2 pre-acts for chunk j (top 64 rows)
        # and layer-3 pre-acts for chunk j-1 (bottom 64 rows).  Static Python
        # unroll -> static slices, full LLO scheduling visibility.
        h2_prev = zeros_half        # prologue: no previous chunk yet
        for j in range(n_chunks + 1):
            if j < n_chunks:
                xc = x_ref[:, j * chunk:(j + 1) * chunk]               # (1, C)
                h1 = jnp.maximum(w1 * xc + b1, 0.0)                    # (64, C)
                top = h1.astype(mxu_dtype)
            else:
                top = zeros_half                                       # epilogue
            stacked = jnp.concatenate([top, h2_prev], axis=0)          # (128, C)
            z = jnp.dot(wp, stacked, preferred_element_type=jnp.float32)
            if j < n_chunks:
                # layer-2 output of chunk j -> carried to next iteration
                h2_prev = jnp.maximum(z[:64, :] + b2, 0.0).astype(mxu_dtype)
            if j >= 1:
                # layer-3 + layer-4 for chunk j-1; layer 4 (M=1) is a sublane
                # reduction on the XLU, not a matmul.
                h3 = jnp.maximum(z[64:, :] + b3, 0.0)                  # (64, C)
                y = jnp.sum(h3 * w4, axis=0, keepdims=True) + b4       # (1, C)
                o_ref[:, (j - 1) * chunk:j * chunk] = y

    return kernel


def mlp_forward(x, params, *, block_b=4096, chunk=512, use_bf16=True,
                use_packed=True):
    """x: (B, 1) f32.  params: [(W, b), ...] in torch nn.Linear (out, in) layout."""
    (w1, b1), (w2, b2), (w3, b3), (w4, b4) = params
    B = x.shape[0]
    if B == 0:
        return jnp.zeros((0, 1), jnp.float32)

    # --- tiling policy -------------------------------------------------------
    # Big lane-dense tile (amortize per-step overhead), but capped at ~half the
    # padded batch so v7x always gets >= 2 grid tiles to shard across its TCs.
    desired = _round_up(block_b, 128)
    bp_min = _round_up(B, 128)
    if bp_min <= 128:
        Bt = 128
    else:
        half = _round_up((bp_min + 1) // 2, 128)
        Bt = max(128, min(desired, half))
    Bp = _round_up(B, Bt)
    n_tiles = Bp // Bt

    # Sub-chunk for the in-kernel packed pipeline: largest multiple of 128 that
    # divides Bt and is <= `chunk`.  Packing only pays when there are >= 2
    # chunks (otherwise half of each packed matmul would be zero padding).
    C = 128
    for cand in range(_round_up(min(chunk, Bt), 128), 127, -128):
        if Bt % cand == 0:
            C = cand
            break
    n_chunks = Bt // C
    packed = use_packed and n_chunks >= 2

    # Batch on lanes: (B, 1) -> (1, Bp), zero-padded (padding sliced off below).
    x_t = jnp.zeros((1, Bp), jnp.float32).at[0, :B].set(x[:, 0].astype(jnp.float32))

    mxu_dtype = jnp.bfloat16 if use_bf16 else jnp.float32
    w1_k = w1.reshape(64, 1).astype(jnp.float32)
    b1_k = b1.reshape(64, 1).astype(jnp.float32)
    b2_k = b2.reshape(64, 1).astype(jnp.float32)
    b3_k = b3.reshape(64, 1).astype(jnp.float32)
    w4_k = w4.reshape(64, 1).astype(jnp.float32)     # column vec for sublane reduce
    b4_k = b4.reshape(1, 1).astype(jnp.float32)

    # Constant index_map -> weight DMA'd once, VMEM-resident across the grid.
    resident = lambda shape: pl.BlockSpec(shape, lambda i: (0, 0))
    io_spec = pl.BlockSpec((1, Bt), lambda i: (0, i))

    if packed:
        wp = jnp.zeros((128, 128), jnp.float32)
        wp = wp.at[:64, :64].set(w2.astype(jnp.float32))
        wp = wp.at[64:, 64:].set(w3.astype(jnp.float32))
        wp = wp.astype(mxu_dtype)
        kernel = _make_packed_kernel(n_chunks, C)
        ins = (x_t, w1_k, b1_k, wp, b2_k, b3_k, w4_k, b4_k)
        in_specs = [io_spec,
                    resident((64, 1)), resident((64, 1)),
                    resident((128, 128)),
                    resident((64, 1)), resident((64, 1)),
                    resident((64, 1)), resident((1, 1))]
    else:
        kernel = _mlp_kernel_simple
        ins = (x_t, w1_k, b1_k, w2.astype(mxu_dtype), b2_k,
               w3.astype(mxu_dtype), b3_k, w4_k, b4_k)
        in_specs = [io_spec,
                    resident((64, 1)), resident((64, 1)),
                    resident((64, 64)), resident((64, 1)),
                    resident((64, 64)), resident((64, 1)),
                    resident((64, 1)), resident((1, 1))]

    out = pl.pallas_call(
        kernel,
        out_shape=jax.ShapeDtypeStruct((1, Bp), jnp.float32),
        grid=(n_tiles,),
        in_specs=in_specs,
        out_specs=io_spec,
        compiler_params=pltpu.CompilerParams(
            dimension_semantics=("parallel",)),
    )(*ins)

    return out[0, :B].reshape(B, 1)


def init_params(key):
    """Deterministic init mirroring torch.nn.Linear shapes: W is (out, in), b is (out,)."""
    sizes = [(64, 1), (64, 64), (64, 64), (1, 64)]
    params = []
    for (fan_out, fan_in) in sizes:
        kw, kb, key = jax.random.split(key, 3)
        bound = 1.0 / (fan_in ** 0.5)
        w = jax.random.uniform(kw, (fan_out, fan_in), jnp.float32, -bound, bound)
        b = jax.random.uniform(kb, (fan_out,), jnp.float32, -bound, bound)
        params.append((w, b))
    return params


def reference_forward(x, params):
    h = x
    for i, (w, b) in enumerate(params):
        h = h @ w.T + b
        if i < 3:
            h = jnp.maximum(h, 0.0)
    return h


if __name__ == "__main__":
    key = jax.random.PRNGKey(0)
    kx, kp = jax.random.split(key)
    params = init_params(kp)

    # 1) Small batch, f32, single tile (simple kernel): tight check vs. reference.
    x_small = jax.random.normal(kx, (8, 1), jnp.float32)
    y_small = mlp_forward(x_small, params, use_bf16=False)
    jax.block_until_ready(y_small)
    ref_small = reference_forward(x_small, params)
    assert y_small.shape == (8, 1)
    assert jnp.allclose(y_small, ref_small, atol=1e-5, rtol=1e-5), "f32 simple path mismatch"

    # 2) f32 packed path: 2 tiles x 2 chunks, ragged tail; the block-diagonal
    #    zeros contribute exact 0.0 so this verifies the packing/pipeline logic.
    x_mid = jax.random.normal(kx, (2000, 1), jnp.float32)
    y_mid = mlp_forward(x_mid, params, use_bf16=False)
    jax.block_until_ready(y_mid)
    ref_mid = reference_forward(x_mid, params)
    assert y_mid.shape == (2000, 1)
    assert jnp.allclose(y_mid, ref_mid, atol=1e-4, rtol=1e-4), "f32 packed path mismatch"

    # 3) bf16 MXU fast path (f32 accumulation), 3 grid tiles with padded tail,
    #    packed pipeline with 2 chunks per tile.
    x_big = jax.random.normal(kx, (3000, 1), jnp.float32)
    y_big = mlp_forward(x_big, params, block_b=1024, use_bf16=True)
    jax.block_until_ready(y_big)
    ref_big = reference_forward(x_big, params)
    assert y_big.shape == (3000, 1)
    assert jnp.allclose(y_big, ref_big, atol=3e-2, rtol=3e-2), "bf16 packed path mismatch"

    print("KERNEL_OK")
</pallas_src>

<mosaic_0001>
module attributes {stable_mosaic.version = 11 : i64} {
  func.func @_mlp_kernel_simple(%arg0: i32, %arg1: memref<1x128xf32, #tpu.memory_space<vmem>>, %arg2: memref<64x1xf32, #tpu.memory_space<vmem>>, %arg3: memref<64x1xf32, #tpu.memory_space<vmem>>, %arg4: memref<64x64xf32, #tpu.memory_space<vmem>>, %arg5: memref<64x1xf32, #tpu.memory_space<vmem>>, %arg6: memref<64x64xf32, #tpu.memory_space<vmem>>, %arg7: memref<64x1xf32, #tpu.memory_space<vmem>>, %arg8: memref<64x1xf32, #tpu.memory_space<vmem>>, %arg9: memref<1x1xf32, #tpu.memory_space<vmem>>, %arg10: memref<1x128xf32, #tpu.memory_space<vmem>>) attributes {dimension_semantics = [#tpu.dimension_semantics<parallel>], iteration_bounds = array<i64: 1>, scalar_prefetch = 0 : i64, scratch_operands = 0 : i64, tpu.core_type = #tpu.core_type<tc>, window_params = [{transform_indices = @transform_0, window_bounds = array<i64: 1, 128>}, {pipeline_mode = #tpu.pipeline_mode<synchronous>, transform_indices = @transform_1, window_bounds = array<i64: 64, 1>}, {pipeline_mode = #tpu.pipeline_mode<synchronous>, transform_indices = @transform_2, window_bounds = array<i64: 64, 1>}, {pipeline_mode = #tpu.pipeline_mode<synchronous>, transform_indices = @transform_3, window_bounds = array<i64: 64, 64>}, {pipeline_mode = #tpu.pipeline_mode<synchronous>, transform_indices = @transform_4, window_bounds = array<i64: 64, 1>}, {pipeline_mode = #tpu.pipeline_mode<synchronous>, transform_indices = @transform_5, window_bounds = array<i64: 64, 64>}, {pipeline_mode = #tpu.pipeline_mode<synchronous>, transform_indices = @transform_6, window_bounds = array<i64: 64, 1>}, {pipeline_mode = #tpu.pipeline_mode<synchronous>, transform_indices = @transform_7, window_bounds = array<i64: 64, 1>}, {pipeline_mode = #tpu.pipeline_mode<synchronous>, transform_indices = @transform_8, window_bounds = array<i64: 1, 1>}, {transform_indices = @transform_9, window_bounds = array<i64: 1, 128>}]} {
    %c0 = arith.constant 0 : index
    %c0_0 = arith.constant 0 : index
    %0 = vector.load %arg1[%c0, %c0_0] : memref<1x128xf32, #tpu.memory_space<vmem>>, vector<1x128xf32>
    %c0_1 = arith.constant 0 : index
    %c0_2 = arith.constant 0 : index
    %1 = vector.load %arg2[%c0_1, %c0_2] : memref<64x1xf32, #tpu.memory_space<vmem>>, vector<64x1xf32>
    %2 = vector.broadcast %1 : vector<64x1xf32> to vector<64x128xf32>
    %3 = vector.broadcast %0 : vector<1x128xf32> to vector<64x128xf32>
    %4 = arith.mulf %2, %3 : vector<64x128xf32>
    %c0_3 = arith.constant 0 : index
    %c0_4 = arith.constant 0 : index
    %5 = vector.load %arg3[%c0_3, %c0_4] : memref<64x1xf32, #tpu.memory_space<vmem>>, vector<64x1xf32>
    %6 = vector.broadcast %5 : vector<64x1xf32> to vector<64x128xf32>
    %7 = arith.addf %4, %6 : vector<64x128xf32>
    %cst = arith.constant 0.000000e+00 : f32
    %8 = vector.broadcast %cst : f32 to vector<64x128xf32>
    %9 = arith.maximumf %7, %8 : vector<64x128xf32>
    %c0_5 = arith.constant 0 : index
    %c0_6 = arith.constant 0 : index
    %10 = vector.load %arg4[%c0_5, %c0_6] : memref<64x64xf32, #tpu.memory_space<vmem>>, vector<64x64xf32>
    %cst_7 = arith.constant dense<0.000000e+00> : vector<64x128xf32>
    %11 = tpu.matmul %10, %9, %cst_7 {dimension_numbers = #tpu.dot_dimension_numbers<[1], [0], [0], [1], [0, 0, 1, 1], [], []>} : vector<64x64xf32>, vector<64x128xf32>, vector<64x128xf32> -> vector<64x128xf32>
    %c0_8 = arith.constant 0 : index
    %c0_9 = arith.constant 0 : index
    %12 = vector.load %arg5[%c0_8, %c0_9] : memref<64x1xf32, #tpu.memory_space<vmem>>, vector<64x1xf32>
    %13 = vector.broadcast %12 : vector<64x1xf32> to vector<64x128xf32>
    %14 = arith.addf %11, %13 : vector<64x128xf32>
    %cst_10 = arith.constant 0.000000e+00 : f32
    %15 = vector.broadcast %cst_10 : f32 to vector<64x128xf32>
    %16 = arith.maximumf %14, %15 : vector<64x128xf32>
    %c0_11 = arith.constant 0 : index
    %c0_12 = arith.constant 0 : index
    %17 = vector.load %arg6[%c0_11, %c0_12] : memref<64x64xf32, #tpu.memory_space<vmem>>, vector<64x64xf32>
    %cst_13 = arith.constant dense<0.000000e+00> : vector<64x128xf32>
    %18 = tpu.matmul %17, %16, %cst_13 {dimension_numbers = #tpu.dot_dimension_numbers<[1], [0], [0], [1], [0, 0, 1, 1], [], []>} : vector<64x64xf32>, vector<64x128xf32>, vector<64x128xf32> -> vector<64x128xf32>
    %c0_14 = arith.constant 0 : index
    %c0_15 = arith.constant 0 : index
    %19 = vector.load %arg7[%c0_14, %c0_15] : memref<64x1xf32, #tpu.memory_space<vmem>>, vector<64x1xf32>
    %20 = vector.broadcast %19 : vector<64x1xf32> to vector<64x128xf32>
    %21 = arith.addf %18, %20 : vector<64x128xf32>
    %cst_16 = arith.constant 0.000000e+00 : f32
    %22 = vector.broadcast %cst_16 : f32 to vector<64x128xf32>
    %23 = arith.maximumf %21, %22 : vector<64x128xf32>
    %c0_17 = arith.constant 0 : index
    %c0_18 = arith.constant 0 : index
    %24 = vector.load %arg8[%c0_17, %c0_18] : memref<64x1xf32, #tpu.memory_space<vmem>>, vector<64x1xf32>
    %25 = vector.broadcast %24 : vector<64x1xf32> to vector<64x128xf32>
    %26 = arith.mulf %23, %25 : vector<64x128xf32>
    %cst_19 = arith.constant dense<0.000000e+00> : vector<128xf32>
    %27 = vector.multi_reduction <add>, %26, %cst_19 [0] : vector<64x128xf32> to vector<128xf32>
    %28 = vector.shape_cast %27 : vector<128xf32> to vector<1x128xf32>
    %c0_20 = arith.constant 0 : index
    %c0_21 = arith.constant 0 : index
    %29 = vector.load %arg9[%c0_20, %c0_21] : memref<1x1xf32, #tpu.memory_space<vmem>>, vector<1x1xf32>
    %30 = vector.broadcast %29 : vector<1x1xf32> to vector<1x128xf32>
    %31 = arith.addf %28, %30 : vector<1x128xf32>
    %c0_22 = arith.constant 0 : index
    %c0_23 = arith.constant 0 : index
    %32 = vector.load %arg10[%c0_22, %c0_23] : memref<1x128xf32, #tpu.memory_space<vmem>>, vector<1x128xf32>
    tpu.vector_store %arg10[%c0_22, %c0_23], %31 {strides = array<i32>} : memref<1x128xf32, #tpu.memory_space<vmem>>, vector<1x128xf32>,
    return
  }
  func.func @transform_0(%arg0: i32) -> (i32, i32) {
    %c0_i32 = arith.constant 0 : i32
    %c0_i32_0 = arith.constant 0 : i32
    return %c0_i32, %arg0 : i32, i32
  }
  func.func @transform_1(%arg0: i32) -> (i32, i32) {
    %c0_i32 = arith.constant 0 : i32
    %c0_i32_0 = arith.constant 0 : i32
    %c0_i32_1 = arith.constant 0 : i32
    return %c0_i32, %c0_i32_0 : i32, i32
  }
  func.func @transform_2(%arg0: i32) -> (i32, i32) {
    %c0_i32 = arith.constant 0 : i32
    %c0_i32_0 = arith.constant 0 : i32
    %c0_i32_1 = arith.constant 0 : i32
    return %c0_i32, %c0_i32_0 : i32, i32
  }
  func.func @transform_3(%arg0: i32) -> (i32, i32) {
    %c0_i32 = arith.constant 0 : i32
    %c0_i32_0 = arith.constant 0 : i32
    %c0_i32_1 = arith.constant 0 : i32
    return %c0_i32, %c0_i32_0 : i32, i32
  }
  func.func @transform_4(%arg0: i32) -> (i32, i32) {
    %c0_i32 = arith.constant 0 : i32
    %c0_i32_0 = arith.constant 0 : i32
    %c0_i32_1 = arith.constant 0 : i32
    return %c0_i32, %c0_i32_0 : i32, i32
  }
  func.func @transform_5(%arg0: i32) -> (i32, i32) {
    %c0_i32 = arith.constant 0 : i32
    %c0_i32_0 = arith.constant 0 : i32
    %c0_i32_1 = arith.constant 0 : i32
    return %c0_i32, %c0_i32_0 : i32, i32
  }
  func.func @transform_6(%arg0: i32) -> (i32, i32) {
    %c0_i32 = arith.constant 0 : i32
    %c0_i32_0 = arith.constant 0 : i32
    %c0_i32_1 = arith.constant 0 : i32
    return %c0_i32, %c0_i32_0 : i32, i32
  }
  func.func @transform_7(%arg0: i32) -> (i32, i32) {
    %c0_i32 = arith.constant 0 : i32
    %c0_i32_0 = arith.constant 0 : i32
    %c0_i32_1 = arith.constant 0 : i32
    return %c0_i32, %c0_i32_0 : i32, i32
  }
  func.func @transform_8(%arg0: i32) -> (i32, i32) {
    %c0_i32 = arith.constant 0 : i32
    %c0_i32_0 = arith.constant 0 : i32
    %c0_i32_1 = arith.constant 0 : i32
    return %c0_i32, %c0_i32_0 : i32, i32
  }
  func.func @transform_9(%arg0: i32) -> (i32, i32) {
    %c0_i32 = arith.constant 0 : i32
    %c0_i32_0 = arith.constant 0 : i32
    return %c0_i32, %arg0 : i32, i32
  }
}

</mosaic_0001>

<bundles_post_ra>
// kernel: tpu_custom_call.1
= control target key start
LH: loop header
LB: loop body
LE: loop exit
PB: predicated region body
PF: predicated region fallthrough
CT: control target
= control target key end

     0   :  { %s1063_s0 = inlined_call_operand.vmem [shape: f32[1,128], index: 0, kind: input, shape index: {}]   ;;  %s1064_s1 = inlined_call_operand.vmem [shape: f32[64,1], index: 1, kind: input, shape index: {}]   ;;  %s1065_s2 = inlined_call_operand.vmem [shape: f32[64,1], index: 2, kind: input, shape index: {}]   ;;  %s1066_s3 = inlined_call_operand.vmem [shape: f32[64,64], index: 3, kind: input, shape index: {}]   ;;  %s1067_s4 = inlined_call_operand.vmem [shape: f32[64,1], index: 4, kind: input, shape index: {}]   ;;  %s1068_s5 = inlined_call_operand.vmem [shape: f32[64,64], index: 5, kind: input, shape index: {}]   ;;  %s1069_s6 = inlined_call_operand.vmem [shape: f32[64,1], index: 6, kind: input, shape index: {}]   ;;  %s1070_s7 = inlined_call_operand.vmem [shape: f32[64,1], index: 7, kind: input, shape index: {}]   ;;  %s1071_s8 = inlined_call_operand.<no memory space> [shape: f32[1,1], index: 8, kind: input, shape index: {}]   ;;  %s1072_s9 = inlined_call_operand.hbm [shape: f32[1,128], index: 9, kind: output, shape index: {}]  }
   0x1   :  { %v14_v0 = vstv %s1071_s8 }
   0x2   :  { %15 = vst [vmem:[#allocation2] sm:$0x1] %v14_v0 }
   0x3   :  { %v98_v1 = vld [vmem:[%s1065_s2] sm:$0xff]  ;;  %v809_v3 = vmov 0   ;;  %v99_v4 = vld [vmem:[%s1065_s2 + $0x8] sm:$0xff]  ;;  %v39_v6 = vld [vmem:[%s1064_s1 + $0x18] sm:$0xff] }
   0x4   :  { %v36_v2 = vld [vmem:[%s1064_s1] sm:$0xff]  ;;  %784 = vset.pattern.permute.xlu1 %v809_v3  ;;  %783 = vset.pattern.permute.xlu0 %v809_v3  ;;  %v37_v5 = vld [vmem:[%s1064_s1 + $0x8] sm:$0xff]  ;;  %v38_v7 = vld [vmem:[%s1064_s1 + $0x10] sm:$0xff] }
   0x5   :  { %108 = vperm.xlu1 %784, %v98_v1   ;;  %46 = vperm.xlu0 %783, %v36_v2   ;;  %v101_v8 = vld [vmem:[%s1065_s2 + $0x18] sm:$0xff]  ;;  %v100_v9 = vld [vmem:[%s1065_s2 + $0x10] sm:$0xff] }
   0x9   :  { %113 = vperm.xlu1 %784, %v99_v4   ;;  %51 = vperm.xlu0 %783, %v37_v5  }
   0xd   :  { %61 = vperm.xlu1 %784, %v39_v6   ;;  %56 = vperm.xlu0 %783, %v38_v7  }
  0x11   :  { %123 = vperm.xlu1 %784, %v101_v8   ;;  %118 = vperm.xlu0 %783, %v100_v9  }
  0x12   :  { %16 = vsyncpa [#allocation4], 0  ;;  %v41_v10 = vld [vmem:[%s1064_s1 + $0x28] sm:$0xff]  ;;  %v40_v11 = vld [vmem:[%s1064_s1 + $0x20] sm:$0xff]  ;;  %vm218_vm0 = vcmask 523264  }
  0x13   :  { %v103_v12 = vld [vmem:[%s1065_s2 + $0x28] sm:$0xff]  ;;  %v102_v13 = vld [vmem:[%s1065_s2 + $0x20] sm:$0xff]  ;;  %v43_v14 = vld [vmem:[%s1064_s1 + $0x38] sm:$0xff] }
  0x14   :  { %v42_v15 = vld [vmem:[%s1064_s1 + $0x30] sm:$0xff]  ;;  %v105_v16 = vld [vmem:[%s1065_s2 + $0x38] sm:$0xff]  ;;  %v171_v18 = vld [vmem:[%s1067_s4 + $0x8] sm:$0xff] }
  0x15   :  { %71 = vperm.xlu1 %784, %v41_v10   ;;  %66 = vperm.xlu0 %783, %v40_v11   ;;  %v104_v17 = vld [vmem:[%s1065_s2 + $0x30] sm:$0xff]  ;;  %v170_v19 = vld [vmem:[%s1067_s4] sm:$0xff]  ;;  %v173_v20 = vld [vmem:[%s1067_s4 + $0x18] sm:$0xff] }
  0x16   :  { %v172_v21 = vld [vmem:[%s1067_s4 + $0x10] sm:$0xff]  ;;  %v162_v22 = vld [vmem:[%s1066_s3] sm:$0xff]  ;;  %v175_v23 = vld [vmem:[%s1067_s4 + $0x28] sm:$0xff] }
  0x17   :  { %v174_v24 = vld [vmem:[%s1067_s4 + $0x20] sm:$0xff]  ;;  %709 = vmatprep.mubr.msk.f32.mxu0 %vm218_vm0, %v162_v22  ;;  %v177_v25 = vld [vmem:[%s1067_s4 + $0x38] sm:$0xff]  ;;  %v176_v26 = vld [vmem:[%s1067_s4 + $0x30] sm:$0xff] }
  0x18   :  { %v365_v27 = vld [vmem:[%s1069_s6 + $0x8] sm:$0xff]  ;;  %v364_v28 = vld [vmem:[%s1069_s6] sm:$0xff]  ;;  %v367_v29 = vld [vmem:[%s1069_s6 + $0x18] sm:$0xff] }
  0x19   :  { %133 = vperm.xlu1 %784, %v103_v12   ;;  %128 = vperm.xlu0 %783, %v102_v13   ;;  %v366_v30 = vld [vmem:[%s1069_s6 + $0x10] sm:$0xff]  ;;  %v550_v31 = vld [vmem:[%s1070_s7 + $0x8] sm:$0xff]  ;;  %v549_v32 = vld [vmem:[%s1070_s7] sm:$0xff] }
  0x1a   :  { %v551_v33 = vld [vmem:[%s1070_s7 + $0x10] sm:$0xff]  ;;  %v368_v34 = vld [vmem:[%s1069_s6 + $0x20] sm:$0xff]  ;;  %v552_v35 = vld [vmem:[%s1070_s7 + $0x18] sm:$0xff] }
  0x1b   :  { %v369_v36 = vld [vmem:[%s1069_s6 + $0x28] sm:$0xff]  ;;  %v553_v37 = vld [vmem:[%s1070_s7 + $0x20] sm:$0xff]  ;;  %v370_v38 = vld [vmem:[%s1069_s6 + $0x30] sm:$0xff] }
  0x1c   :  { %v554_v39 = vld [vmem:[%s1070_s7 + $0x28] sm:$0xff]  ;;  %v371_v40 = vld [vmem:[%s1069_s6 + $0x38] sm:$0xff]  ;;  %v555_v42 = vld [vmem:[%s1070_s7 + $0x30] sm:$0xff] }
  0x1d   :  { %81 = vperm.xlu1 %784, %v43_v14   ;;  %76 = vperm.xlu0 %783, %v42_v15   ;;  %v556_v41 = vld [vmem:[%s1070_s7 + $0x38] sm:$0xff]  ;;  %v618_v43 = vld [vmem:[#allocation2] sm:$0x1] }
  0x1e   :  { %v644_v44 = vld [vmem:[%s1063_s0] ss:$0 sm:$0xff] }
  0x21   :  { %143 = vperm.xlu1 %784, %v105_v16   ;;  %138 = vperm.xlu0 %783, %v104_v17  }
  0x25   :  { %185 = vperm.xlu1 %784, %v171_v18   ;;  %180 = vperm.xlu0 %783, %v170_v19  }
  0x29   :  { %195 = vperm.xlu1 %784, %v173_v20   ;;  %190 = vperm.xlu0 %783, %v172_v21  }
  0x2d   :  { %205 = vperm.xlu1 %784, %v175_v23   ;;  %200 = vperm.xlu0 %783, %v174_v24  }
  0x31   :  { %215 = vperm.xlu1 %784, %v177_v25   ;;  %210 = vperm.xlu0 %783, %v176_v26   ;;  %v163_v25 = vld [vmem:[%s1066_s3 + $0x8] sm:$0xff]  ;;  %v164_v26 = vld [vmem:[%s1066_s3 + $0x10] sm:$0xff] }
  0x35   :  { %379 = vperm.xlu1 %784, %v365_v27   ;;  %374 = vperm.xlu0 %783, %v364_v28   ;;  %v165_v27 = vld [vmem:[%s1066_s3 + $0x18] sm:$0xff]  ;;  %v166_v28 = vld [vmem:[%s1066_s3 + $0x20] sm:$0xff] }
  0x39   :  { %389 = vperm.xlu1 %784, %v367_v29   ;;  %384 = vperm.xlu0 %783, %v366_v30   ;;  %v167_v29 = vld [vmem:[%s1066_s3 + $0x28] sm:$0xff]  ;;  %v168_v30 = vld [vmem:[%s1066_s3 + $0x30] sm:$0xff] }
  0x3d   :  { %564 = vperm.xlu1 %784, %v550_v31   ;;  %559 = vperm.xlu0 %783, %v549_v32   ;;  %v169_v31 = vld [vmem:[%s1066_s3 + $0x38] sm:$0xff]  ;;  %v356_v32 = vld [vmem:[%s1068_s5] sm:$0xff] }
  0x3e   :  { %737 = vmatprep.mubr.msk.f32.mxu1 %vm218_vm0, %v356_v32 }
  0x41   :  { %569 = vperm.xlu1 %784, %v551_v33   ;;  %394 = vperm.xlu0 %783, %v368_v34  }
  0x45   :  { %574 = vperm.xlu1 %784, %v552_v35   ;;  %399 = vperm.xlu0 %783, %v369_v36  }
  0x49   :  { %579 = vperm.xlu1 %784, %v553_v37   ;;  %404 = vperm.xlu0 %783, %v370_v38  }
  0x4d   :  { %584 = vperm.xlu1 %784, %v554_v39   ;;  %409 = vperm.xlu0 %783, %v371_v40  }
  0x51   :  { %594 = vperm.xlu1 %784, %v556_v41   ;;  %589 = vperm.xlu0 %783, %v555_v42  }
  0x55   :  { %621 = vperm.xlu0 %783, %v618_v43  }
  0x84   :  { %v109_v45 = vpop.permute.xlu1 %108  ;;  %v47_v46 = vpop.permute.xlu0 %46 }
  0x85   :  { %v90_v47 = vmul.f32 %v644_v44, %v47_v46 }
  0x87   :  { %v146_v50 = vadd.f32 %v109_v45, %v90_v47 }
  0x88   :  { %v114_v48 = vpop.permute.xlu1 %113  ;;  %v52_v49 = vpop.permute.xlu0 %51 }
  0x89   :  { %v91_v51 = vmul.f32 %v644_v44, %v52_v49  ;;  %v154_v55 = vmax.f32 %v146_v50, 0.0 }
  0x8b   :  { %v147_v52 = vadd.f32 %v114_v48, %v91_v51 }
  0x8c   :  { %v62_v53 = vpop.permute.xlu1 %61  ;;  %v57_v54 = vpop.permute.xlu0 %56 }
  0x8d   :  { %v155_v56 = vmax.f32 %v147_v52, 0.0  ;;  %v93_v57 = vmul.f32 %v644_v44, %v62_v53  ;;  %v92_v58 = vmul.f32 %v644_v44, %v57_v54 }
  0x8f   :  { %v749_v59 = vpack.c.bf16 %v155_v56, %v154_v55 }
  0x90   :  { %v124_v60 = vpop.permute.xlu1 %123  ;;  %v119_v61 = vpop.permute.xlu0 %118 }
  0x91   :  { %v149_v62 = vadd.f32 %v124_v60, %v93_v57  ;;  %v148_v63 = vadd.f32 %v119_v61, %v92_v58  ;;  %750 = vmatprep.subr.bf16.mxu0 %v749_v59 }
  0x92   :  { %752 = vmatpush3.bf16.msra.mxu0 %v749_v59 }
  0x93   :  { %v157_v0 = vmax.f32 %v149_v62, 0.0  ;;  %v156_v1 = vmax.f32 %v148_v63, 0.0 }
  0x94   :  { %v72_v2 = vpop.permute.xlu1 %71  ;;  %v67_v3 = vpop.permute.xlu0 %66 }
  0x95   :  { %v753_v4 = vpack.c.bf16 %v157_v0, %v156_v1  ;;  %v95_v5 = vmul.f32 %v644_v44, %v72_v2  ;;  %v94_v6 = vmul.f32 %v644_v44, %v67_v3 }
  0x97   :  { %754 = vmatprep.subr.bf16.mxu0 %v753_v4 }
  0x98   :  { %v134_v7 = vpop.permute.xlu1 %133  ;;  %v129_v8 = vpop.permute.xlu0 %128  ;;  %756 = vmatpush3.bf16.msra.mxu0 %v753_v4 }
  0x99   :  { %v151_v9 = vadd.f32 %v134_v7, %v95_v5  ;;  %v150_v10 = vadd.f32 %v129_v8, %v94_v6  ;;  %v357_v5 = vld [vmem:[%s1068_s5 + $0x8] sm:$0xff]  ;;  %v358_v6 = vld [vmem:[%s1068_s5 + $0x10] sm:$0xff]  ;;  %v359_v7 = vld [vmem:[%s1068_s5 + $0x18] sm:$0xff] }
  0x9a   :  { %v360_v8 = vld [vmem:[%s1068_s5 + $0x20] sm:$0xff] }
  0x9b   :  { %v159_v11 = vmax.f32 %v151_v9, 0.0  ;;  %v158_v12 = vmax.f32 %v150_v10, 0.0  ;;  %v361_v9 = vld [vmem:[%s1068_s5 + $0x28] sm:$0xff]  ;;  %v362_v10 = vld [vmem:[%s1068_s5 + $0x30] sm:$0xff] }
  0x9c   :  { %v82_v13 = vpop.permute.xlu1 %81  ;;  %v77_v14 = vpop.permute.xlu0 %76 }
  0x9d   :  { %v757_v15 = vpack.c.bf16 %v159_v11, %v158_v12  ;;  %v97_v16 = vmul.f32 %v644_v44, %v82_v13  ;;  %v96_v17 = vmul.f32 %v644_v44, %v77_v14  ;;  %v363_v11 = vld [vmem:[%s1068_s5 + $0x38] sm:$0xff]  ;;  %s810_s5 = smov [#allocation3]  }
  0x9e   :  { %s636_s6 = sshll.u32 %s810_s5, 4  ;;  %s637_s6 = int_to_ptr.vmem [resolvable:$true] %s636_s6 }
  0x9f   :  { %758 = vmatprep.subr.bf16.mxu0 %v757_v15  ;;  %s785_s7 = scalar_lea.vmem %s637_s6, 16  ;;  %s789_s22 = scalar_lea.vmem %s637_s6, 32 }
  0xa0   :  { %v144_v18 = vpop.permute.xlu1 %143  ;;  %v139_v19 = vpop.permute.xlu0 %138  ;;  %760 = vmatpush3.bf16.msra.mxu0 %v757_v15  ;;  %p786_p0 = scmp.ne.s32.totalorder %s637_s6, %s785_s7  ;;  %p790_p1 = scmp.lt.s32.totalorder %s637_s6, %s637_s6 }
  0xa1   :  { %v153_v20 = vadd.f32 %v144_v18, %v97_v16  ;;  %v152_v21 = vadd.f32 %v139_v19, %v96_v17  ;;  %p791_p2 = scmp.lt.s32.totalorder %s789_s22, %s785_s7 }
  0xa3   :  { %v161_v22 = vmax.f32 %v153_v20, 0.0  ;;  %v160_v23 = vmax.f32 %v152_v21, 0.0  ;;  %p792_p3 = por %p791_p2, %p790_p1 }
  0xa4   :  { %v186_v33 = vpop.permute.xlu1 %185  ;;  %v181_v34 = vpop.permute.xlu0 %180 }
  0xa5   :  { %v761_v24 = vpack.c.bf16 %v161_v22, %v160_v23  ;;  %p793_p4 = pnand %p792_p3, %p786_p0 }
  0xa7   :  { %762 = vmatprep.subr.bf16.mxu0 %v761_v24 }
  0xa8   :  { %764 = vmatpush3.bf16.msra.mxu0 %v761_v24  ;;  %v196_v35 = vpop.permute.xlu1 %195  ;;  %v191_v37 = vpop.permute.xlu0 %190 }
  0xab   :  { %710 = vmatmul.mubr.msk.f32.vlgmr.msra.gmra.mrb[0].mxu0 %vm218_vm0, %v163_v25 }
  0xac   :  { %712 = vmatprep.mubr.msk.f32.mxu0 %vm218_vm0, %v164_v26  ;;  %v206_v46 = vpop.permute.xlu1 %205  ;;  %v201_v49 = vpop.permute.xlu0 %200 }
  0xaf   :  { %713 = vmatmul.mubr.msk.f32.gmra.mrb[2].mxu0 %vm218_vm0, %v165_v27 }
  0xb0   :  { %715 = vmatprep.mubr.msk.f32.mxu0 %vm218_vm0, %v166_v28  ;;  %v216_v58 = vpop.permute.xlu1 %215  ;;  %v211_v61 = vpop.permute.xlu0 %210 }
  0xb3   :  { %716 = vmatmul.mubr.msk.f32.gmra.mrb[4].mxu0 %vm218_vm0, %v167_v29 }
  0xb4   :  { %718 = vmatprep.mubr.msk.f32.mxu0 %vm218_vm0, %v168_v30  ;;  %v375_v12 = vpop.permute.xlu0 %374  ;;  %v380_v13 = vpop.permute.xlu1 %379 }
  0xb7   :  { %719 = vmatmul.mubr.msk.f32.gmra.mrb[6].mxu0 %vm218_vm0, %v169_v31 }
  0xb8   :  { %v385_v14 = vpop.permute.xlu0 %384  ;;  %v390_v15 = vpop.permute.xlu1 %389 }
  0xbc   :  { %v560_v16 = vpop.permute.xlu0 %559  ;;  %v565_v17 = vpop.permute.xlu1 %564 }
  0xc0   :  { %v395_v18 = vpop.permute.xlu0 %394  ;;  %v570_v19 = vpop.permute.xlu1 %569 }
  0xc4   :  { %v400_v20 = vpop.permute.xlu0 %399  ;;  %v575_v22 = vpop.permute.xlu1 %574 }
  0xc8   :  { %v405_v29 = vpop.permute.xlu0 %404 }
 0x17e   :  { %v711_v36 = vpop.f32.mrb[0].mxu0 }
 0x17f   :  { %v315_v38 = vadd.f32 %v711_v36, %v186_v33  ;;  %v309_v39 = vpop.f32.mrb[1].mxu0 }
 0x180   :  { %v310_v40 = vadd.f32 %v309_v39, %v181_v34 }
 0x181   :  { %v349_v41 = vmax.f32 %v315_v38, 0.0 }
 0x182   :  { %v348_v42 = vmax.f32 %v310_v40, 0.0  ;;  %v714_v43 = vpop.f32.mrb[2].mxu0 }
 0x183   :  { %v325_v44 = vadd.f32 %v714_v43, %v196_v35  ;;  %v319_v45 = vpop.f32.mrb[3].mxu0  ;;  %v580_v35 = vpop.permute.xlu1 %579 }
 0x184   :  { %v320_v47 = vadd.f32 %v319_v45, %v191_v37  ;;  %v765_v48 = vpack.c.bf16 %v349_v41, %v348_v42 }
 0x185   :  { %v351_v50 = vmax.f32 %v325_v44, 0.0  ;;  %v410_v44 = vpop.permute.xlu0 %409 }
 0x186   :  { %v350_v51 = vmax.f32 %v320_v47, 0.0  ;;  %v717_v52 = vpop.f32.mrb[4].mxu0  ;;  %766 = vmatprep.subr.bf16.mxu1 %v765_v48 }
 0x187   :  { %v335_v53 = vadd.f32 %v717_v52, %v206_v46  ;;  %v329_v54 = vpop.f32.mrb[5].mxu0  ;;  %768 = vmatpush3.bf16.msra.mxu1 %v765_v48 }
 0x188   :  { %v769_v55 = vpack.c.bf16 %v351_v50, %v350_v51  ;;  %v330_v56 = vadd.f32 %v329_v54, %v201_v49  ;;  %v585_v50 = vpop.permute.xlu1 %584 }
 0x189   :  { %v353_v57 = vmax.f32 %v335_v53, 0.0 }
 0x18a   :  { %v352_v59 = vmax.f32 %v330_v56, 0.0  ;;  %v720_v60 = vpop.f32.mrb[6].mxu0  ;;  %770 = vmatprep.subr.bf16.mxu1 %v769_v55 }
 0x18b   :  { %v345_v62 = vadd.f32 %v720_v60, %v216_v58  ;;  %v339_v63 = vpop.f32.mrb[7].mxu0  ;;  %772 = vmatpush3.bf16.msra.mxu1 %v769_v55  ;;  %v590_v60 = vpop.permute.xlu0 %589 }
 0x18c   :  { %v773_v0 = vpack.c.bf16 %v353_v57, %v352_v59  ;;  %v340_v1 = vadd.f32 %v339_v63, %v211_v61  ;;  %v595_v63 = vpop.permute.xlu1 %594 }
 0x18d   :  { %v355_v2 = vmax.f32 %v345_v62, 0.0 }
 0x18e   :  { %v354_v3 = vmax.f32 %v340_v1, 0.0  ;;  %774 = vmatprep.subr.bf16.mxu1 %v773_v0 }
 0x18f   :  { %776 = vmatpush3.bf16.msra.mxu1 %v773_v0 }
 0x190   :  { %v777_v4 = vpack.c.bf16 %v355_v2, %v354_v3  ;;  %v624_v2 = vlaneseq }
 0x192   :  { %778 = vmatprep.subr.bf16.mxu1 %v777_v4 }
 0x193   :  { %780 = vmatpush3.bf16.msra.mxu1 %v777_v4 }
 0x196   :  { %738 = vmatmul.mubr.msk.f32.vlgmr.msra.gmra.mrb[0].mxu1 %vm218_vm0, %v357_v5  ;;  %v625_v5 = vshrl.u32 %v624_v2, 7 }
 0x197   :  { %740 = vmatprep.mubr.msk.f32.mxu1 %vm218_vm0, %v358_v6 }
 0x19a   :  { %741 = vmatmul.mubr.msk.f32.gmra.mrb[2].mxu1 %vm218_vm0, %v359_v7 }
 0x19b   :  { %743 = vmatprep.mubr.msk.f32.mxu1 %vm218_vm0, %v360_v8  ;;  %v626_v8 = vsub.s32 0, %v625_v5 }
 0x19e   :  { %744 = vmatmul.mubr.msk.f32.gmra.mrb[4].mxu1 %vm218_vm0, %v361_v9 }
 0x19f   :  { %746 = vmatprep.mubr.msk.f32.mxu1 %vm218_vm0, %v362_v10  ;;  %v622_v10 = vpop.permute.xlu0 %621 }
 0x1a2   :  { %747 = vmatmul.mubr.msk.f32.gmra.mrb[6].mxu1 %vm218_vm0, %v363_v11 }
 0x269   :  { %v739_v21 = vpop.f32.mrb[0].mxu1 }
 0x26a   :  { %v508_v23 = vadd.f32 %v739_v21, %v380_v13  ;;  %v502_v24 = vpop.f32.mrb[1].mxu1 }
 0x26b   :  { %v503_v25 = vadd.f32 %v502_v24, %v375_v12  ;;  %v627_v12 = vrot.slane %v622_v10, %v626_v8 }
 0x26c   :  { %v542_v26 = vmax.f32 %v508_v23, 0.0 }
 0x26d   :  { %v541_v27 = vmax.f32 %v503_v25, 0.0  ;;  %v742_v28 = vpop.f32.mrb[2].mxu1 }
 0x26e   :  { %v598_v30 = vmul.f32 %v565_v17, %v542_v26  ;;  %v518_v31 = vadd.f32 %v742_v28, %v390_v15  ;;  %v512_v32 = vpop.f32.mrb[3].mxu1 }
 0x26f   :  { %v597_v33 = vmul.f32 %v560_v16, %v541_v27  ;;  %v513_v34 = vadd.f32 %v512_v32, %v385_v14 }
 0x270   :  { %v544_v37 = vmax.f32 %v518_v31, 0.0 }
 0x271   :  { %v605_v36 = vadd.f32 %v598_v30, %v597_v33  ;;  %v543_v38 = vmax.f32 %v513_v34, 0.0  ;;  %v745_v39 = vpop.f32.mrb[4].mxu1 }
 0x272   :  { %v528_v40 = vadd.f32 %v745_v39, %v400_v20  ;;  %v522_v41 = vpop.f32.mrb[5].mxu1  ;;  %v600_v45 = vmul.f32 %v575_v22, %v544_v37 }
 0x273   :  { %v599_v42 = vmul.f32 %v570_v19, %v543_v38  ;;  %v523_v43 = vadd.f32 %v522_v41, %v395_v18 }
 0x274   :  { %v546_v47 = vmax.f32 %v528_v40, 0.0 }
 0x275   :  { %v606_v46 = vadd.f32 %v605_v36, %v599_v42  ;;  %v545_v48 = vmax.f32 %v523_v43, 0.0  ;;  %v748_v49 = vpop.f32.mrb[6].mxu1 }
 0x276   :  { %v538_v51 = vadd.f32 %v748_v49, %v410_v44  ;;  %v532_v52 = vpop.f32.mrb[7].mxu1  ;;  %v602_v56 = vmul.f32 %v585_v50, %v546_v47 }
 0x277   :  { %v601_v53 = vmul.f32 %v580_v35, %v545_v48  ;;  %v607_v54 = vadd.f32 %v606_v46, %v600_v45  ;;  %v533_v55 = vadd.f32 %v532_v52, %v405_v29 }
 0x278   :  { %v548_v58 = vmax.f32 %v538_v51, 0.0 }
 0x279   :  { %v608_v57 = vadd.f32 %v607_v54, %v601_v53  ;;  %v547_v59 = vmax.f32 %v533_v55, 0.0 }
 0x27a   :  { %v604_v0 = vmul.f32 %v595_v63, %v548_v58 }
 0x27b   :  { %v603_v61 = vmul.f32 %v590_v60, %v547_v59  ;;  %v609_v62 = vadd.f32 %v608_v57, %v602_v56 }
 0x27d   :  { %v610_v1 = vadd.f32 %v609_v62, %v603_v61 }
 0x27f   :  { %v611_v3 = vadd.f32 %v610_v1, %v604_v0 }
 0x281   :  { %v612_v4 = vrot.slane %v611_v3, 4 }
 0x283   :  { %v613_v6 = vadd.f32 %v612_v4, %v611_v3 }
 0x285   :  { %v614_v7 = vrot.slane %v613_v6, 2 }
 0x287   :  { %v615_v9 = vadd.f32 %v614_v7, %v613_v6 }
 0x289   :  { %v616_v11 = vrot.slane %v615_v9, 1 }
 0x28b   :  { %v617_v13 = vadd.f32 %v616_v11, %v615_v9 }
 0x28d   :  { %v628_v14 = vadd.f32 %v627_v12, %v617_v13 }
 0x28f   :  { %629 = vst [vmem:[#allocation3] sm:$0x1] %v628_v14 }
 0x290   :  { %796 = shalt.err (!%p793_p4)
}
 0x291   :  { %s797_s24 = scalar_lea.hbm %s1072_s9, 16 }
 0x292   :  { %p798_p5 = scmp.ne.s32.totalorder %s1072_s9, %s797_s24  ;;  %p801_p6 = scmp.lt.u32.totalorder %s797_s24, %s1072_s9 }
 0x294   :  { %p803_p7 = pnand %p801_p6, %p798_p5 }
 0x296   :  { %806 = shalt.err (!%p803_p7)
}
 0x297   :  { %639 = dma.vmem_to_hbm [thread:$0]  %s637_s6, 16, %s1072_s9, [#allocation4]  }
 0x298   :  { %807 = dma.done.wait [#allocation4], 16  }
 0x299   :  { %808 = vsyncadd [#allocation4], 4294967280 }
 0x29a   :  { %643 = vsyncpa [#allocation4], 1 }

</bundles_post_ra>
